<compile_context>
chip_gen: v5e
topology: v5e:2x2
jax: 0.10.0
libtpu: 0.0.40
codegen_flags: <defaults>
</compile_context>

<pallas_src>
import functools

import jax
import jax.numpy as jnp
from jax.experimental import pallas as pl
from jax.experimental.pallas import tpu as pltpu

_LANE = 128          # TPU lane width: pad hidden/action dims so vector ops are lane-dense.
_SUBLANE_BF16 = 16   # bf16 packs 2 rows/sublane -> batch tiles are multiples of 16.


def _round_up(x, m):
    return ((x + m - 1) // m) * m


def actor_kernel(x_ref, w1_ref, b1_ref, w2_ref, b2_ref, w3_ref, b3_ref,
                 env_scale_ref, env_offset_ref, o_ref):
    """One batch tile: 3 bf16 matmuls (f32 accumulate) + relu/relu/tanh + rescale FMA."""
    x = x_ref[...]  # bf16 [TB, IN]

    # linear1 + relu  (MXU bf16, f32 accumulator; elementwise stays f32)
    h1 = jnp.dot(x, w1_ref[...], preferred_element_type=jnp.float32) + b1_ref[...]
    h1 = jnp.maximum(h1, 0.0)

    # linear2 + relu
    h2 = jnp.dot(h1.astype(jnp.bfloat16), w2_ref[...],
                 preferred_element_type=jnp.float32) + b2_ref[...]
    h2 = jnp.maximum(h2, 0.0)

    # policy layer + tanh (tanh goes to the EUP slot, effectively free alongside the matmuls)
    pi = jnp.dot(h2.astype(jnp.bfloat16), w3_ref[...],
                 preferred_element_type=jnp.float32) + b3_ref[...]
    pi = jnp.tanh(pi)

    # rescale_function with tanh(-inf) = -1, tanh(inf) = +1:
    #   out = (pi + 1) * (env_max - env_min)/2 + env_min = pi*scale + (scale + env_min)
    # -> single FMA per element with host-precomputed scale/offset.
    o_ref[...] = pi * env_scale_ref[...] + env_offset_ref[...]


def prepare_params(params, env_min, env_max):
    """One-time packing: bf16 weights, f32 biases; hidden & action dims zero-padded to 128 lanes.

    Zero padding is exact: padded hidden units get weight column = 0 and bias = 0, so after
    ReLU they are 0 and feed zero rows of the next weight matrix -> no numeric change.
    """
    w1, b1, w2, b2, w3, b3 = params
    hidden = w1.shape[1]
    out_dim = w3.shape[1]
    hid_pad = _round_up(hidden, _LANE)
    out_pad = _round_up(out_dim, _LANE)
    hp = hid_pad - hidden
    op = out_pad - out_dim

    w1p = jnp.pad(w1, ((0, 0), (0, hp))).astype(jnp.bfloat16)
    b1p = jnp.pad(b1.astype(jnp.float32), ((0, 0), (0, hp)))
    w2p = jnp.pad(w2, ((0, hp), (0, hp))).astype(jnp.bfloat16)
    b2p = jnp.pad(b2.astype(jnp.float32), ((0, 0), (0, hp)))
    w3p = jnp.pad(w3, ((0, hp), (0, op))).astype(jnp.bfloat16)
    b3p = jnp.pad(b3.astype(jnp.float32), ((0, 0), (0, op)))

    env_scale = (env_max - env_min).astype(jnp.float32) * 0.5
    env_offset = env_scale + env_min.astype(jnp.float32)
    env_scale_p = jnp.pad(env_scale, ((0, 0), (0, op)))
    env_offset_p = jnp.pad(env_offset, ((0, 0), (0, op)))
    return (w1p, b1p, w2p, b2p, w3p, b3p, env_scale_p, env_offset_p)


@functools.partial(jax.jit, static_argnames=("out_dim",))
def actor_forward(state, packed, out_dim):
    """state: [B, input_dims] float32. Returns rescaled policy [B, out_dim] float32."""
    w1, b1, w2, b2, w3, b3, env_scale_p, env_offset_p = packed
    B, in_dims = state.shape
    hid_pad = w1.shape[1]
    out_pad = w3.shape[1]

    # Batch tile: up to 256 rows/step for large B (DMA/compute overlap via auto
    # double-buffering), rounded to a multiple of 16 for bf16 sublane packing.
    TB = min(256, _round_up(B, _SUBLANE_BF16))
    B_pad = _round_up(B, TB)
    grid = (B_pad // TB,)

    x = state.astype(jnp.bfloat16)
    if B_pad != B:
        x = jnp.pad(x, ((0, B_pad - B), (0, 0)))

    tiled = lambda i: (i, 0)       # activation stream: tiled over batch
    resident = lambda i: (0, 0)    # weights/biases/env: same block every step -> stay in VMEM

    in_specs = [
        pl.BlockSpec((TB, in_dims), tiled),          # x
        pl.BlockSpec((in_dims, hid_pad), resident),  # w1 (lane-padded hidden)
        pl.BlockSpec((1, hid_pad), resident),        # b1
        pl.BlockSpec((hid_pad, hid_pad), resident),  # w2
        pl.BlockSpec((1, hid_pad), resident),        # b2
        pl.BlockSpec((hid_pad, out_pad), resident),  # w3 (lane-padded action dim)
        pl.BlockSpec((1, out_pad), resident),        # b3
        pl.BlockSpec((1, out_pad), resident),        # env_scale
        pl.BlockSpec((1, out_pad), resident),        # env_offset
    ]
    out_specs = pl.BlockSpec((TB, out_pad), tiled)

    # VMEM budget: resident weights (+double buffer) + 2x (input tile + output tile) + slack,
    # clamped to [16 MiB, 48 MiB] so it also fits v7x's 64 MiB physical VMEM.
    weight_bytes = ((w1.size + w2.size + w3.size) * 2
                    + (b1.size + b2.size + b3.size
                       + env_scale_p.size + env_offset_p.size) * 4)
    tile_bytes = TB * in_dims * 2 + TB * out_pad * 4
    vmem_limit = min(max(2 * (weight_bytes + 2 * tile_bytes) + (4 << 20), 16 << 20),
                     48 << 20)

    flops = 2 * B_pad * (in_dims * hid_pad + hid_pad * hid_pad + hid_pad * out_pad)
    bytes_accessed = x.size * 2 + weight_bytes + B_pad * out_pad * 4

    out_padded = pl.pallas_call(
        actor_kernel,
        out_shape=jax.ShapeDtypeStruct((B_pad, out_pad), jnp.float32),
        grid=grid,
        in_specs=in_specs,
        out_specs=out_specs,
        compiler_params=pltpu.CompilerParams(
            dimension_semantics=("parallel",),
            vmem_limit_bytes=int(vmem_limit)),
        cost_estimate=pl.CostEstimate(
            flops=int(flops),
            transcendentals=int(B_pad * out_pad),
            bytes_accessed=int(bytes_accessed)),
    )(x, w1, b1, w2, b2, w3, b3, env_scale_p, env_offset_p)

    return out_padded[:B, :out_dim]


def init_params(key, input_dims, hidden_dim, output_dim):
    """PyTorch-style (uniform +/- 1/sqrt(fan_in)) init; weights as [in, out], biases [1, out]."""
    ks = jax.random.split(key, 6)

    def lin(kw, kb, fan_in, fan_out):
        bound = 1.0 / jnp.sqrt(fan_in)
        w = jax.random.uniform(kw, (fan_in, fan_out), jnp.float32, -bound, bound)
        b = jax.random.uniform(kb, (1, fan_out), jnp.float32, -bound, bound)
        return w, b

    w1, b1 = lin(ks[0], ks[1], input_dims, hidden_dim)
    w2, b2 = lin(ks[2], ks[3], hidden_dim, hidden_dim)
    w3, b3 = lin(ks[4], ks[5], hidden_dim, output_dim)
    return (w1, b1, w2, b2, w3, b3)


def reference_forward_f32(state, params, env_min, env_max):
    w1, b1, w2, b2, w3, b3 = params
    h1 = jnp.maximum(state @ w1 + b1, 0.0)
    h2 = jnp.maximum(h1 @ w2 + b2, 0.0)
    pi = jnp.tanh(h2 @ w3 + b3)
    return (pi + 1.0) * (env_max - env_min) * 0.5 + env_min


def reference_forward_bf16(state, params, env_min, env_max):
    """Same math as the kernel: bf16 matmuls with f32 accumulation, f32 elementwise."""
    w1, b1, w2, b2, w3, b3 = params
    bf = jnp.bfloat16
    h1 = jnp.maximum(
        jnp.dot(state.astype(bf), w1.astype(bf), preferred_element_type=jnp.float32) + b1, 0.0)
    h2 = jnp.maximum(
        jnp.dot(h1.astype(bf), w2.astype(bf), preferred_element_type=jnp.float32) + b2, 0.0)
    pi = jnp.tanh(
        jnp.dot(h2.astype(bf), w3.astype(bf), preferred_element_type=jnp.float32) + b3)
    return (pi + 1.0) * (env_max - env_min) * 0.5 + env_min


if __name__ == "__main__":
    key = jax.random.PRNGKey(0)

    batch = 8
    input_dims = 16
    hidden_dim = 32
    output_dim = 4

    k_state, k_params = jax.random.split(key)
    state = jax.random.normal(k_state, (batch, input_dims), dtype=jnp.float32)
    params = init_params(k_params, input_dims, hidden_dim, output_dim)

    # env_bounds = (env_min, env_max), per-action-dim
    env_min = jnp.full((1, output_dim), -2.0, dtype=jnp.float32)
    env_max = jnp.full((1, output_dim), 2.0, dtype=jnp.float32)

    packed = prepare_params(params, env_min, env_max)
    out = actor_forward(state, packed, out_dim=output_dim)
    out = jax.block_until_ready(out)

    assert out.shape == (batch, output_dim)

    # Exactness vs. a reference that uses the same bf16-matmul/f32-accumulate recipe.
    ref_bf16 = reference_forward_bf16(state, params, env_min, env_max)
    assert jnp.allclose(out, ref_bf16, atol=2e-3, rtol=2e-3), (
        f"bf16 ref mismatch: max abs err {float(jnp.max(jnp.abs(out - ref_bf16)))}")

    # Fidelity vs. the original full-f32 PyTorch semantics (bf16 matmul tolerance).
    ref_f32 = reference_forward_f32(state, params, env_min, env_max)
    assert jnp.allclose(out, ref_f32, atol=5e-2, rtol=5e-2), (
        f"f32 ref mismatch: max abs err {float(jnp.max(jnp.abs(out - ref_f32)))}")

    # TODO(synk): choose_action's numpy exploration noise / clipping and the state/action
    # buffer lists are host-side RL bookkeeping, not part of the forward pass -> not kernelized.
    print("KERNEL_OK")
</pallas_src>

<mosaic_0001>
module attributes {stable_mosaic.version = 11 : i64} {
  func.func @actor_kernel(%arg0: i32, %arg1: memref<16x16xbf16, #tpu.memory_space<vmem>>, %arg2: memref<16x128xbf16, #tpu.memory_space<vmem>>, %arg3: memref<1x128xf32, #tpu.memory_space<vmem>>, %arg4: memref<128x128xbf16, #tpu.memory_space<vmem>>, %arg5: memref<1x128xf32, #tpu.memory_space<vmem>>, %arg6: memref<128x128xbf16, #tpu.memory_space<vmem>>, %arg7: memref<1x128xf32, #tpu.memory_space<vmem>>, %arg8: memref<1x128xf32, #tpu.memory_space<vmem>>, %arg9: memref<1x128xf32, #tpu.memory_space<vmem>>, %arg10: memref<16x128xf32, #tpu.memory_space<vmem>>) attributes {dimension_semantics = [#tpu.dimension_semantics<parallel>], iteration_bounds = array<i64: 1>, scalar_prefetch = 0 : i64, scratch_operands = 0 : i64, tpu.core_type = #tpu.core_type<tc>, window_params = [{transform_indices = @transform_0, window_bounds = array<i64: 16, 16>}, {pipeline_mode = #tpu.pipeline_mode<synchronous>, transform_indices = @transform_1, window_bounds = array<i64: 16, 128>}, {pipeline_mode = #tpu.pipeline_mode<synchronous>, transform_indices = @transform_2, window_bounds = array<i64: 1, 128>}, {pipeline_mode = #tpu.pipeline_mode<synchronous>, transform_indices = @transform_3, window_bounds = array<i64: 128, 128>}, {pipeline_mode = #tpu.pipeline_mode<synchronous>, transform_indices = @transform_4, window_bounds = array<i64: 1, 128>}, {pipeline_mode = #tpu.pipeline_mode<synchronous>, transform_indices = @transform_5, window_bounds = array<i64: 128, 128>}, {pipeline_mode = #tpu.pipeline_mode<synchronous>, transform_indices = @transform_6, window_bounds = array<i64: 1, 128>}, {pipeline_mode = #tpu.pipeline_mode<synchronous>, transform_indices = @transform_7, window_bounds = array<i64: 1, 128>}, {pipeline_mode = #tpu.pipeline_mode<synchronous>, transform_indices = @transform_8, window_bounds = array<i64: 1, 128>}, {transform_indices = @transform_9, window_bounds = array<i64: 16, 128>}]} {
    %c0 = arith.constant 0 : index
    %c0_0 = arith.constant 0 : index
    %0 = vector.load %arg1[%c0, %c0_0] : memref<16x16xbf16, #tpu.memory_space<vmem>>, vector<16x16xbf16>
    %c0_1 = arith.constant 0 : index
    %c0_2 = arith.constant 0 : index
    %1 = vector.load %arg2[%c0_1, %c0_2] : memref<16x128xbf16, #tpu.memory_space<vmem>>, vector<16x128xbf16>
    %cst = arith.constant dense<0.000000e+00> : vector<16x128xf32>
    %2 = tpu.matmul %0, %1, %cst {dimension_numbers = #tpu.dot_dimension_numbers<[1], [0], [0], [1], [0, 0, 1, 1], [], []>} : vector<16x16xbf16>, vector<16x128xbf16>, vector<16x128xf32> -> vector<16x128xf32>
    %c0_3 = arith.constant 0 : index
    %c0_4 = arith.constant 0 : index
    %3 = vector.load %arg3[%c0_3, %c0_4] : memref<1x128xf32, #tpu.memory_space<vmem>>, vector<1x128xf32>
    %4 = vector.broadcast %3 : vector<1x128xf32> to vector<16x128xf32>
    %5 = arith.addf %2, %4 : vector<16x128xf32>
    %cst_5 = arith.constant 0.000000e+00 : f32
    %6 = vector.broadcast %cst_5 : f32 to vector<16x128xf32>
    %7 = arith.maximumf %5, %6 : vector<16x128xf32>
    %8 = arith.truncf %7 : vector<16x128xf32> to vector<16x128xbf16>
    %c0_6 = arith.constant 0 : index
    %c0_7 = arith.constant 0 : index
    %9 = vector.load %arg4[%c0_6, %c0_7] : memref<128x128xbf16, #tpu.memory_space<vmem>>, vector<128x128xbf16>
    %cst_8 = arith.constant dense<0.000000e+00> : vector<16x128xf32>
    %10 = tpu.matmul %8, %9, %cst_8 {dimension_numbers = #tpu.dot_dimension_numbers<[1], [0], [0], [1], [0, 0, 1, 1], [], []>} : vector<16x128xbf16>, vector<128x128xbf16>, vector<16x128xf32> -> vector<16x128xf32>
    %c0_9 = arith.constant 0 : index
    %c0_10 = arith.constant 0 : index
    %11 = vector.load %arg5[%c0_9, %c0_10] : memref<1x128xf32, #tpu.memory_space<vmem>>, vector<1x128xf32>
    %12 = vector.broadcast %11 : vector<1x128xf32> to vector<16x128xf32>
    %13 = arith.addf %10, %12 : vector<16x128xf32>
    %cst_11 = arith.constant 0.000000e+00 : f32
    %14 = vector.broadcast %cst_11 : f32 to vector<16x128xf32>
    %15 = arith.maximumf %13, %14 : vector<16x128xf32>
    %16 = arith.truncf %15 : vector<16x128xf32> to vector<16x128xbf16>
    %c0_12 = arith.constant 0 : index
    %c0_13 = arith.constant 0 : index
    %17 = vector.load %arg6[%c0_12, %c0_13] : memref<128x128xbf16, #tpu.memory_space<vmem>>, vector<128x128xbf16>
    %cst_14 = arith.constant dense<0.000000e+00> : vector<16x128xf32>
    %18 = tpu.matmul %16, %17, %cst_14 {dimension_numbers = #tpu.dot_dimension_numbers<[1], [0], [0], [1], [0, 0, 1, 1], [], []>} : vector<16x128xbf16>, vector<128x128xbf16>, vector<16x128xf32> -> vector<16x128xf32>
    %c0_15 = arith.constant 0 : index
    %c0_16 = arith.constant 0 : index
    %19 = vector.load %arg7[%c0_15, %c0_16] : memref<1x128xf32, #tpu.memory_space<vmem>>, vector<1x128xf32>
    %20 = vector.broadcast %19 : vector<1x128xf32> to vector<16x128xf32>
    %21 = arith.addf %18, %20 : vector<16x128xf32>
    %22 = math.tanh %21 : vector<16x128xf32>
    %c0_17 = arith.constant 0 : index
    %c0_18 = arith.constant 0 : index
    %23 = vector.load %arg8[%c0_17, %c0_18] : memref<1x128xf32, #tpu.memory_space<vmem>>, vector<1x128xf32>
    %24 = vector.broadcast %23 : vector<1x128xf32> to vector<16x128xf32>
    %25 = arith.mulf %22, %24 : vector<16x128xf32>
    %c0_19 = arith.constant 0 : index
    %c0_20 = arith.constant 0 : index
    %26 = vector.load %arg9[%c0_19, %c0_20] : memref<1x128xf32, #tpu.memory_space<vmem>>, vector<1x128xf32>
    %27 = vector.broadcast %26 : vector<1x128xf32> to vector<16x128xf32>
    %28 = arith.addf %25, %27 : vector<16x128xf32>
    %c0_21 = arith.constant 0 : index
    %c0_22 = arith.constant 0 : index
    %29 = vector.load %arg10[%c0_21, %c0_22] : memref<16x128xf32, #tpu.memory_space<vmem>>, vector<16x128xf32>
    tpu.vector_store %arg10[%c0_21, %c0_22], %28 {strides = array<i32>} : memref<16x128xf32, #tpu.memory_space<vmem>>, vector<16x128xf32>,
    return
  }
  func.func @transform_0(%arg0: i32) -> (i32, i32) {
    %c0_i32 = arith.constant 0 : i32
    %c0_i32_0 = arith.constant 0 : i32
    return %arg0, %c0_i32 : i32, i32
  }
  func.func @transform_1(%arg0: i32) -> (i32, i32) {
    %c0_i32 = arith.constant 0 : i32
    %c0_i32_0 = arith.constant 0 : i32
    %c0_i32_1 = arith.constant 0 : i32
    return %c0_i32, %c0_i32_0 : i32, i32
  }
  func.func @transform_2(%arg0: i32) -> (i32, i32) {
    %c0_i32 = arith.constant 0 : i32
    %c0_i32_0 = arith.constant 0 : i32
    %c0_i32_1 = arith.constant 0 : i32
    return %c0_i32, %c0_i32_0 : i32, i32
  }
  func.func @transform_3(%arg0: i32) -> (i32, i32) {
    %c0_i32 = arith.constant 0 : i32
    %c0_i32_0 = arith.constant 0 : i32
    %c0_i32_1 = arith.constant 0 : i32
    return %c0_i32, %c0_i32_0 : i32, i32
  }
  func.func @transform_4(%arg0: i32) -> (i32, i32) {
    %c0_i32 = arith.constant 0 : i32
    %c0_i32_0 = arith.constant 0 : i32
    %c0_i32_1 = arith.constant 0 : i32
    return %c0_i32, %c0_i32_0 : i32, i32
  }
  func.func @transform_5(%arg0: i32) -> (i32, i32) {
    %c0_i32 = arith.constant 0 : i32
    %c0_i32_0 = arith.constant 0 : i32
    %c0_i32_1 = arith.constant 0 : i32
    return %c0_i32, %c0_i32_0 : i32, i32
  }
  func.func @transform_6(%arg0: i32) -> (i32, i32) {
    %c0_i32 = arith.constant 0 : i32
    %c0_i32_0 = arith.constant 0 : i32
    %c0_i32_1 = arith.constant 0 : i32
    return %c0_i32, %c0_i32_0 : i32, i32
  }
  func.func @transform_7(%arg0: i32) -> (i32, i32) {
    %c0_i32 = arith.constant 0 : i32
    %c0_i32_0 = arith.constant 0 : i32
    %c0_i32_1 = arith.constant 0 : i32
    return %c0_i32, %c0_i32_0 : i32, i32
  }
  func.func @transform_8(%arg0: i32) -> (i32, i32) {
    %c0_i32 = arith.constant 0 : i32
    %c0_i32_0 = arith.constant 0 : i32
    %c0_i32_1 = arith.constant 0 : i32
    return %c0_i32, %c0_i32_0 : i32, i32
  }
  func.func @transform_9(%arg0: i32) -> (i32, i32) {
    %c0_i32 = arith.constant 0 : i32
    %c0_i32_0 = arith.constant 0 : i32
    return %arg0, %c0_i32 : i32, i32
  }
}

</mosaic_0001>

<bundles_post_ra>
// kernel: actor_forward.1
= control target key start
LH: loop header
LB: loop body
LE: loop exit
PB: predicated region body
PF: predicated region fallthrough
CT: control target
= control target key end

     0   :  { %14 = vsyncpa [#allocation3], 0  ;;  %s537_s0 = inlined_call_operand.vmem [shape: bf16[16,16], index: 0, kind: input, shape index: {}]   ;;  %s538_s1 = inlined_call_operand.vmem [shape: bf16[16,128], index: 1, kind: input, shape index: {}]   ;;  %s539_s2 = inlined_call_operand.vmem [shape: f32[1,128], index: 2, kind: input, shape index: {}]   ;;  %s540_s3 = inlined_call_operand.hbm [shape: bf16[128,128], index: 3, kind: input, shape index: {}]   ;;  %s541_s4 = inlined_call_operand.vmem [shape: f32[1,128], index: 4, kind: input, shape index: {}]   ;;  %s542_s5 = inlined_call_operand.hbm [shape: bf16[128,128], index: 5, kind: input, shape index: {}]   ;;  %s543_s6 = inlined_call_operand.vmem [shape: f32[1,128], index: 6, kind: input, shape index: {}]   ;;  %s544_s7 = inlined_call_operand.vmem [shape: f32[1,128], index: 7, kind: input, shape index: {}]   ;;  %s545_s8 = inlined_call_operand.vmem [shape: f32[1,128], index: 8, kind: input, shape index: {}]   ;;  %s546_s9 = inlined_call_operand.vmem [shape: f32[16,128], index: 9, kind: output, shape index: {}]  }
   0x1   :  { %s26_s11 = sshll.u32 %s540_s3, 4  ;;  %s27_s11 = int_to_ptr.hbm [resolvable:$true] %s26_s11 }
   0x2   :  { %15 = vsyncpa [#allocation5], 0  ;;  %s450_s12 = smov [#allocation2]   ;;  %s41_s16 = sshll.u32 %s542_s5, 4  ;;  %s42_s16 = int_to_ptr.hbm [resolvable:$true] %s41_s16 }
   0x3   :  { %s28_s13 = sshll.u32 %s450_s12, 4  ;;  %s451_s17 = smov 64   ;;  %s29_s13 = int_to_ptr.vmem [resolvable:$true] %s28_s13 }
   0x4   :  { %s452_s18 = smov 4   ;;  %s453_s19 = smov [#allocation4]  }
   0x5   :  { %34 = dma.hbm_to_vmem [thread:$0]  %s27_s11, 1024, %s29_s13, [#allocation3], %s451_s17, %s451_s17, %s452_s18  }
   0x6   :  { %s43_s20 = sshll.u32 %s453_s19, 4  ;;  %s44_s20 = int_to_ptr.vmem [resolvable:$true] %s43_s20 }
   0x7   :  { %49 = dma.hbm_to_vmem [thread:$0]  %s42_s16, 1024, %s44_s20, [#allocation5], %s451_s17, %s451_s17, %s452_s18  }
   0x8   :  { %446 = dma.done.wait [#allocation3], 1024  }
   0x9   :  { %447 = vsyncadd [#allocation3], 4294966272 }
   0xa   :  { %448 = dma.done.wait [#allocation5], 1024  }
   0xb   :  { %449 = vsyncadd [#allocation5], 4294966272  ;;  %v368_v0 = vld [vmem:[%s538_s1] sm:$0xff]  ;;  %v376_v1 = vld [vmem:[#allocation2 + $0x38] sm:$0xff]  ;;  %vm84_vm0 = vcmask 130048  }
   0xc   :  { %v367_v2 = vld [vmem:[%s537_s0] sm:$0xff]  ;;  %95 = vmatpush.bf16.msra.mxu0 %v368_v0  ;;  %173 = vmatpush.bf16.msra.mxu1 %v376_v1  ;;  %v375_v3 = vld [vmem:[#allocation2 + $0x30] sm:$0xff]  ;;  %v374_v4 = vld [vmem:[#allocation2 + $0x28] sm:$0xff] }
   0xd   :  { %v373_v5 = vld [vmem:[#allocation2 + $0x20] sm:$0xff]  ;;  %v372_v6 = vld [vmem:[#allocation2 + $0x18] sm:$0xff]  ;;  %v371_v7 = vld [vmem:[#allocation2 + $0x10] sm:$0xff] }
   0xe   :  { %v370_v8 = vld [vmem:[#allocation2 + $0x8] sm:$0xff]  ;;  %v369_v9 = vld [vmem:[#allocation2] sm:$0xff]  ;;  %v384_v10 = vld [vmem:[#allocation4 + $0x38] sm:$0xff] }
   0xf   :  { %302 = vmatmul.msk.bf16.vlgmr.msra.gmra.mxu0 %vm84_vm0, %v367_v2  ;;  %258 = vmatpush.bf16.msra.mxu2 %v384_v10  ;;  %v383_v11 = vld [vmem:[#allocation4 + $0x30] sm:$0xff]  ;;  %v382_v12 = vld [vmem:[#allocation4 + $0x28] sm:$0xff]  ;;  %v381_v13 = vld [vmem:[#allocation4 + $0x20] sm:$0xff] }
  0x10   :  { %174 = vmatpush.bf16.msra.mxu1 %v375_v3  ;;  %v389_v15 = vld [vmem:[%s539_s2] ss:$0 sm:$0xff]  ;;  %v380_v22 = vld [vmem:[#allocation4 + $0x18] sm:$0xff]  ;;  %v379_v23 = vld [vmem:[#allocation4 + $0x10] sm:$0xff] }
  0x11   :  { %v378_v24 = vld [vmem:[#allocation4 + $0x8] sm:$0xff]  ;;  %v377_v25 = vld [vmem:[#allocation4] sm:$0xff] }
  0x12   :  { %v390_v27 = vld [vmem:[%s541_s4] ss:$0 sm:$0xff] }
  0x13   :  { %259 = vmatpush.bf16.msra.mxu2 %v383_v11  ;;  %v391_v34 = vld [vmem:[%s543_s6] ss:$0 sm:$0xff] }
  0x14   :  { %175 = vmatpush.bf16.msra.mxu1 %v374_v4  ;;  %v392_v37 = vld [vmem:[%s544_s7] ss:$0 sm:$0xff] }
  0x15   :  { %v393_v38 = vld [vmem:[%s545_s8] ss:$0 sm:$0xff] }
  0x17   :  { %260 = vmatpush.bf16.msra.mxu2 %v382_v12 }
  0x18   :  { %176 = vmatpush.bf16.msra.mxu1 %v373_v5 }
  0x1b   :  { %261 = vmatpush.bf16.msra.mxu2 %v381_v13 }
  0x1c   :  { %177 = vmatpush.bf16.msra.mxu1 %v372_v6 }
  0x1f   :  { %262 = vmatpush.bf16.msra.mxu2 %v380_v22 }
  0x20   :  { %178 = vmatpush.bf16.msra.mxu1 %v371_v7 }
  0x23   :  { %263 = vmatpush.bf16.msra.mxu2 %v379_v23 }
  0x24   :  { %179 = vmatpush.bf16.msra.mxu1 %v370_v8 }
  0x27   :  { %264 = vmatpush.bf16.msra.mxu2 %v378_v24 }
  0x28   :  { %180 = vmatpush.bf16.msra.mxu1 %v369_v9 }
  0x2b   :  { %265 = vmatpush.bf16.msra.mxu2 %v377_v25 }
  0x8c   :  { %v97_v14 = vpop.f32.mrf.mxu0 }
  0x8d   :  { %v98_v16 = vadd.f32 %v389_v15, %v97_v14 }
  0x8f   :  { %v102_v19 = vmax.f32 %v98_v16, 0.0 }
  0x94   :  { %v99_v17 = vpop.f32.mrf.mxu0 }
  0x95   :  { %v100_v18 = vadd.f32 %v389_v15, %v99_v17 }
  0x97   :  { %v103_v20 = vmax.f32 %v100_v18, 0.0 }
  0x99   :  { %v104_v21 = vpack.c.bf16 %v103_v20, %v102_v19 }
  0x9b   :  { %181 = vmatmul.bf16.vlgmr.msra.gmra.mxu1 %v104_v21 }
 0x118   :  { %v182_v26 = vpop.f32.mrf.mxu1 }
 0x119   :  { %v183_v28 = vadd.f32 %v390_v27, %v182_v26 }
 0x11b   :  { %v187_v31 = vmax.f32 %v183_v28, 0.0 }
 0x120   :  { %v184_v29 = vpop.f32.mrf.mxu1 }
 0x121   :  { %v185_v30 = vadd.f32 %v390_v27, %v184_v29 }
 0x123   :  { %v188_v32 = vmax.f32 %v185_v30, 0.0 }
 0x125   :  { %v189_v33 = vpack.c.bf16 %v188_v32, %v187_v31 }
 0x127   :  { %266 = vmatmul.bf16.vlgmr.msra.gmra.mxu2 %v189_v33 }
 0x1aa   :  { %v267_v35 = vpop.f32.mrf.mxu2 }
 0x1ab   :  { %v268_v36 = vadd.f32 %v391_v34, %v267_v35 }
 0x1ad   :  { %394 = vtanh.f32 %v268_v36 }
 0x1b2   :  { %v269_v39 = vpop.f32.mrf.mxu2 }
 0x1b3   :  { %v395_v40 = vpop.eup %394  ;;  %v270_v41 = vadd.f32 %v391_v34, %v269_v39 }
 0x1b4   :  { %v278_v42 = vmul.f32 %v395_v40, %v392_v37 }
 0x1b5   :  { %396 = vtanh.f32 %v270_v41 }
 0x1b6   :  { %v284_v43 = vadd.f32 %v393_v38, %v278_v42 }
 0x1b8   :  { %286 = vst [vmem:[%s546_s9] sm:$0xff] %v284_v43 }
 0x1bb   :  { %v397_v44 = vpop.eup %396 }
 0x1bc   :  { %v279_v45 = vmul.f32 %v397_v44, %v392_v37 }
 0x1be   :  { %v285_v46 = vadd.f32 %v393_v38, %v279_v45 }
 0x1c0   :  { %287 = vst [vmem:[%s546_s9 + $0x8] sm:$0xff] %v285_v46 }
 0x1c1   :  { %292 = vsyncpa [#allocation3], 1 }
 0x1c2   :  { %293 = vsyncpa [#allocation5], 1 }

</bundles_post_ra>
